<compile_context>
chip_gen: v6e
topology: v6e:2x2x1
jax: 0.10.0
libtpu: 0.0.40
codegen_flags: <defaults>
</compile_context>

<pallas_src>
import functools

import jax
import jax.numpy as jnp
from jax.experimental import pallas as pl
from jax.experimental.pallas import tpu as pltpu


def _cdiv(a, b):
    return -(-a // b)


def _round_up(a, b):
    return _cdiv(a, b) * b


def _dice_sums_kernel(logits_ref, label_ref, numer_ref, denom_ref,
                      numer_acc, denom_acc, *, p, ignore_lb, hw, tile_hw, ns):
    # logits_ref: (1, C, T) native dtype ; label_ref: (1, 1, T) int32
    # numer_ref/denom_ref: (1, 1, C, 1) f32 (written only in the epilogue)
    # numer_acc/denom_acc: (C, 128) f32 lane-dense accumulators (VMEM scratch)
    d = pl.program_id(0)          # spatial split shard (core parallel)
    s = pl.program_id(2)          # spatial tile within the shard (reduction)

    @pl.when(s == 0)
    def _init():
        numer_acc[...] = jnp.zeros_like(numer_acc)
        denom_acc[...] = jnp.zeros_like(denom_acc)

    logits = logits_ref[0].astype(jnp.float32)     # (C, T)
    label = label_ref[0].astype(jnp.int32)         # (1, T)
    C, T = logits.shape

    # Global spatial element index of each lane in this tile. Masks (a) the
    # ragged end of the image and (b) duplicate clamped tiles from the split
    # axis, without any HBM-side padding.
    base = (d * ns + s) * tile_hw
    lane = jax.lax.broadcasted_iota(jnp.int32, (1, T), 1) + base
    valid = lane < hw                              # (1, T)

    probs = jax.nn.sigmoid(logits)                 # (C, T) f32

    ignore = label == ignore_lb                    # (1, T)
    lab = jnp.where(ignore, 0, label)              # label[ignore] = 0
    class_ids = jax.lax.broadcasted_iota(jnp.int32, (C, 1), 0)   # (C, 1)
    onehot_mask = (class_ids == lab) & jnp.logical_not(ignore) & valid  # (C, T)

    if p == 1:
        probs_p = probs
    else:
        probs_p = probs ** p

    numer_part = jnp.where(onehot_mask, probs, 0.0)                  # (C, T)
    # one_hot ** p == one_hot (values in {0,1}), so the one-hot contribution
    # to the denominator is just the mask itself.
    denom_part = jnp.where(valid, probs_p, 0.0) + onehot_mask.astype(jnp.float32)

    # Lane-dense fold of the tile into (C, 128) using VPU adds only; the
    # cross-lane reduce and the narrow store happen once per (shard, n).
    na = numer_acc[...]
    da = denom_acc[...]
    for j in range(T // 128):
        sl = slice(j * 128, (j + 1) * 128)
        na = na + numer_part[:, sl]
        da = da + denom_part[:, sl]
    numer_acc[...] = na
    denom_acc[...] = da

    @pl.when(s == pl.num_programs(2) - 1)
    def _finalize():
        numer_ref[0, 0] = jnp.sum(numer_acc[...], axis=-1, keepdims=True)  # (C,1)
        denom_ref[0, 0] = jnp.sum(denom_acc[...], axis=-1, keepdims=True)  # (C,1)


def generalized_soft_dice_loss(logits, label, *, p=1, smooth=1.0,
                               reduction="mean", weight=None, ignore_lb=255,
                               tile_hw=8192, split=2):
    """logits: (N, C, H, W) float (any float dtype), label: (N, H, W) int."""
    N, C, H, W = logits.shape
    HW = H * W

    # Free reshapes only; no padded f32 copy materialized in HBM.
    logits_r = logits.reshape(N, C, HW)                    # native dtype
    label_r = label.astype(jnp.int32).reshape(N, 1, HW)

    # Spatial tile: multiple of 128 lanes, sized for v7x-safe VMEM everywhere.
    tile_hw = max(128, min(int(tile_hw), _round_up(HW, 128)))
    tile_hw = _round_up(tile_hw, 128)
    num_s = _cdiv(HW, tile_hw)          # real spatial tiles covering the image
    split = max(1, int(split))          # size-2 keeps both v7x TCs busy at N=1
    ns = _cdiv(num_s, split)            # tiles per split shard
    last_block = num_s - 1

    def in_map(d, n, s):
        # Clamp so duplicate shard tiles never index past the array; their
        # contribution is zeroed in-kernel via the lane-validity mask.
        return (n, 0, jnp.minimum(d * ns + s, last_block))

    kernel = functools.partial(_dice_sums_kernel, p=p, ignore_lb=ignore_lb,
                               hw=HW, tile_hw=tile_hw, ns=ns)

    numer, denom = pl.pallas_call(
        kernel,
        out_shape=(
            jax.ShapeDtypeStruct((split, N, C, 1), jnp.float32),
            jax.ShapeDtypeStruct((split, N, C, 1), jnp.float32),
        ),
        grid_spec=pltpu.PrefetchScalarGridSpec(
            num_scalar_prefetch=0,
            grid=(split, N, ns),
            in_specs=[
                pl.BlockSpec((1, C, tile_hw), in_map),
                pl.BlockSpec((1, 1, tile_hw), in_map),
            ],
            out_specs=[
                pl.BlockSpec((1, 1, C, 1), lambda d, n, s: (d, n, 0, 0)),
                pl.BlockSpec((1, 1, C, 1), lambda d, n, s: (d, n, 0, 0)),
            ],
            scratch_shapes=[
                pltpu.VMEM((C, 128), jnp.float32),
                pltpu.VMEM((C, 128), jnp.float32),
            ],
        ),
        compiler_params=pltpu.CompilerParams(
            dimension_semantics=("parallel", "parallel", "arbitrary")),
    )(logits_r, label_r)

    # Tiny per-class combine in plain JAX glue.
    numer = jnp.sum(numer.reshape(split, N, C), axis=0)    # (N, C)
    denom = jnp.sum(denom.reshape(split, N, C), axis=0)

    if weight is not None:
        w = jnp.asarray(weight, jnp.float32).reshape(1, -1)
        numer = numer * w
        denom = denom * w

    numer_n = jnp.sum(numer, axis=1)
    denom_n = jnp.sum(denom, axis=1)
    loss = 1.0 - (2.0 * numer_n + smooth) / (denom_n + smooth)
    if reduction == "mean":
        loss = jnp.mean(loss)
    return loss


def _reference(logits, label, *, p=1, smooth=1.0, ignore_lb=255):
    """Pure-JAX reference mirroring the PyTorch forward."""
    logits = logits.astype(jnp.float32)
    N, C, H, W = logits.shape
    ignore = label == ignore_lb
    lab = jnp.where(ignore, 0, label)
    one_hot = jax.nn.one_hot(lab, C, axis=1, dtype=jnp.float32)
    one_hot = jnp.where(ignore[:, None, :, :], 0.0, one_hot)
    probs = jax.nn.sigmoid(logits)
    numer = jnp.sum(probs * one_hot, axis=(2, 3))
    denom = jnp.sum(probs ** p + one_hot ** p, axis=(2, 3))
    numer = jnp.sum(numer, axis=1)
    denom = jnp.sum(denom, axis=1)
    loss = 1.0 - (2.0 * numer + smooth) / (denom + smooth)
    return jnp.mean(loss)


if __name__ == "__main__":
    key = jax.random.PRNGKey(0)
    N, C, H, W = 2, 4, 16, 16
    k1, k2, k3 = jax.random.split(key, 3)

    logits = jax.random.normal(k1, (N, C, H, W), dtype=jnp.float32)
    label = jax.random.randint(k2, (N, H, W), 0, C).astype(jnp.int32)
    # Sprinkle some ignore-label (255) pixels to exercise the ignore path.
    ignore_mask = jax.random.uniform(k3, (N, H, W)) < 0.1
    label = jnp.where(ignore_mask, 255, label)

    loss = generalized_soft_dice_loss(logits, label, p=1, smooth=1.0,
                                      reduction="mean", weight=None,
                                      ignore_lb=255)
    loss = jax.block_until_ready(loss)

    ref = jax.block_until_ready(_reference(logits, label))
    assert abs(float(loss) - float(ref)) < 1e-5, (float(loss), float(ref))

    print("KERNEL_OK")
</pallas_src>

<mosaic_0001>
module attributes {stable_mosaic.version = 11 : i64} {
  func.func @_dice_sums_kernel(%arg0: i32, %arg1: i32, %arg2: i32, %arg3: memref<1x4x256xf32, #tpu.memory_space<vmem>>, %arg4: memref<1x1x256xi32, #tpu.memory_space<vmem>>, %arg5: memref<1x1x4x1xf32, #tpu.memory_space<vmem>>, %arg6: memref<1x1x4x1xf32, #tpu.memory_space<vmem>>, %arg7: memref<4x128xf32, #tpu.memory_space<vmem>>, %arg8: memref<4x128xf32, #tpu.memory_space<vmem>>) attributes {dimension_semantics = [#tpu.dimension_semantics<parallel>, #tpu.dimension_semantics<parallel>, #tpu.dimension_semantics<arbitrary>], iteration_bounds = array<i64: 2, 2, 1>, scalar_prefetch = 0 : i64, scratch_operands = 2 : i64, tpu.core_type = #tpu.core_type<tc>, window_params = [{transform_indices = @transform_0, window_bounds = array<i64: 1, 4, 256>}, {transform_indices = @transform_1, window_bounds = array<i64: 1, 1, 256>}, {transform_indices = @transform_2, window_bounds = array<i64: 1, 1, 4, 1>}, {transform_indices = @transform_3, window_bounds = array<i64: 1, 1, 4, 1>}]} {
    %c0_i32 = arith.constant 0 : i32
    %0 = arith.cmpi eq, %arg2, %c0_i32 : i32
    %1 = arith.extui %0 : i1 to i32
    %c0_i32_0 = arith.constant 0 : i32
    %2 = arith.cmpi ne, %1, %c0_i32_0 : i32
    scf.if %2 {
      %cst_21 = arith.constant 0.000000e+00 : f32
      %57 = vector.broadcast %cst_21 : f32 to vector<4x128xf32>
      %c0_22 = arith.constant 0 : index
      %c0_23 = arith.constant 0 : index
      %58 = vector.load %arg7[%c0_22, %c0_23] : memref<4x128xf32, #tpu.memory_space<vmem>>, vector<4x128xf32>
      tpu.vector_store %arg7[%c0_22, %c0_23], %57 {strides = array<i32>} : memref<4x128xf32, #tpu.memory_space<vmem>>, vector<4x128xf32>,
      %cst_24 = arith.constant 0.000000e+00 : f32
      %59 = vector.broadcast %cst_24 : f32 to vector<4x128xf32>
      %c0_25 = arith.constant 0 : index
      %c0_26 = arith.constant 0 : index
      %60 = vector.load %arg8[%c0_25, %c0_26] : memref<4x128xf32, #tpu.memory_space<vmem>>, vector<4x128xf32>
      tpu.vector_store %arg8[%c0_25, %c0_26], %59 {strides = array<i32>} : memref<4x128xf32, #tpu.memory_space<vmem>>, vector<4x128xf32>,
    } else {
    }
    %c0 = arith.constant 0 : index
    %c0_1 = arith.constant 0 : index
    %c0_2 = arith.constant 0 : index
    %3 = vector.load %arg3[%c0, %c0_1, %c0_2] : memref<1x4x256xf32, #tpu.memory_space<vmem>>, vector<1x4x256xf32>
    %4 = vector.shape_cast %3 : vector<1x4x256xf32> to vector<4x256xf32>
    %c0_3 = arith.constant 0 : index
    %c0_4 = arith.constant 0 : index
    %c0_5 = arith.constant 0 : index
    %5 = vector.load %arg4[%c0_3, %c0_4, %c0_5] : memref<1x1x256xi32, #tpu.memory_space<vmem>>, vector<1x1x256xi32>
    %6 = vector.shape_cast %5 : vector<1x1x256xi32> to vector<1x256xi32>
    %c1_i32 = arith.constant 1 : i32
    %7 = arith.muli %arg0, %c1_i32 : i32
    %8 = arith.addi %7, %arg2 : i32
    %c256_i32 = arith.constant 256 : i32
    %9 = arith.muli %8, %c256_i32 : i32
    %10 = tpu.iota {dimensions = array<i32: 1>} : vector<1x256xi32>
    %11 = vector.broadcast %9 : i32 to vector<1x256xi32>
    %12 = arith.addi %10, %11 : vector<1x256xi32>
    %c256_i32_6 = arith.constant 256 : i32
    %13 = vector.broadcast %c256_i32_6 : i32 to vector<1x256xi32>
    %14 = arith.cmpi slt, %12, %13 : vector<1x256xi32>
    %15 = arith.negf %4 : vector<4x256xf32>
    %16 = math.exp %15 : vector<4x256xf32>
    %cst = arith.constant 1.000000e+00 : f32
    %17 = vector.broadcast %cst : f32 to vector<4x256xf32>
    %18 = arith.addf %17, %16 : vector<4x256xf32>
    %19 = arith.divf %17, %18 : vector<4x256xf32>
    %c255_i32 = arith.constant 255 : i32
    %20 = vector.broadcast %c255_i32 : i32 to vector<1x256xi32>
    %21 = arith.cmpi eq, %6, %20 : vector<1x256xi32>
    %c0_i32_7 = arith.constant 0 : i32
    %22 = vector.broadcast %c0_i32_7 : i32 to vector<1x256xi32>
    %23 = arith.select %21, %22, %6 : vector<1x256xi1>, vector<1x256xi32>
    %24 = tpu.iota {dimensions = array<i32: 0>} : vector<4x1xi32>
    %25 = vector.broadcast %24 : vector<4x1xi32> to vector<4x256xi32>
    %26 = vector.broadcast %23 : vector<1x256xi32> to vector<4x256xi32>
    %27 = arith.cmpi eq, %25, %26 : vector<4x256xi32>
    %cst_8 = arith.constant dense<true> : vector<1x256xi1>
    %28 = arith.xori %21, %cst_8 : vector<1x256xi1>
    %29 = vector.broadcast %28 : vector<1x256xi1> to vector<4x256xi1>
    %30 = arith.andi %27, %29 : vector<4x256xi1>
    %31 = vector.broadcast %14 : vector<1x256xi1> to vector<4x256xi1>
    %32 = arith.andi %30, %31 : vector<4x256xi1>
    %cst_9 = arith.constant 0.000000e+00 : f32
    %33 = vector.broadcast %cst_9 : f32 to vector<4x256xf32>
    %34 = arith.select %32, %19, %33 : vector<4x256xi1>, vector<4x256xf32>
    %cst_10 = arith.constant 0.000000e+00 : f32
    %35 = vector.shape_cast %14 : vector<1x256xi1> to vector<1x256xi1>
    %36 = vector.broadcast %35 : vector<1x256xi1> to vector<4x256xi1>
    %37 = vector.broadcast %cst_10 : f32 to vector<4x256xf32>
    %38 = arith.select %36, %19, %37 : vector<4x256xi1>, vector<4x256xf32>
    %39 = arith.extui %32 : vector<4x256xi1> to vector<4x256xi32>
    %40 = arith.sitofp %39 : vector<4x256xi32> to vector<4x256xf32>
    %41 = arith.addf %38, %40 : vector<4x256xf32>
    %c0_11 = arith.constant 0 : index
    %c0_12 = arith.constant 0 : index
    %42 = vector.load %arg7[%c0_11, %c0_12] : memref<4x128xf32, #tpu.memory_space<vmem>>, vector<4x128xf32>
    %c0_13 = arith.constant 0 : index
    %c0_14 = arith.constant 0 : index
    %43 = vector.load %arg8[%c0_13, %c0_14] : memref<4x128xf32, #tpu.memory_space<vmem>>, vector<4x128xf32>
    %44 = vector.extract_strided_slice %34 {offsets = [0, 0], sizes = [4, 128], strides = [1, 1]} : vector<4x256xf32> to vector<4x128xf32>
    %45 = arith.addf %42, %44 : vector<4x128xf32>
    %46 = vector.extract_strided_slice %41 {offsets = [0, 0], sizes = [4, 128], strides = [1, 1]} : vector<4x256xf32> to vector<4x128xf32>
    %47 = arith.addf %43, %46 : vector<4x128xf32>
    %48 = vector.extract_strided_slice %34 {offsets = [0, 128], sizes = [4, 128], strides = [1, 1]} : vector<4x256xf32> to vector<4x128xf32>
    %49 = arith.addf %45, %48 : vector<4x128xf32>
    %50 = vector.extract_strided_slice %41 {offsets = [0, 128], sizes = [4, 128], strides = [1, 1]} : vector<4x256xf32> to vector<4x128xf32>
    %51 = arith.addf %47, %50 : vector<4x128xf32>
    %c0_15 = arith.constant 0 : index
    %c0_16 = arith.constant 0 : index
    %52 = vector.load %arg7[%c0_15, %c0_16] : memref<4x128xf32, #tpu.memory_space<vmem>>, vector<4x128xf32>
    tpu.vector_store %arg7[%c0_15, %c0_16], %49 {strides = array<i32>} : memref<4x128xf32, #tpu.memory_space<vmem>>, vector<4x128xf32>,
    %c0_17 = arith.constant 0 : index
    %c0_18 = arith.constant 0 : index
    %53 = vector.load %arg8[%c0_17, %c0_18] : memref<4x128xf32, #tpu.memory_space<vmem>>, vector<4x128xf32>
    tpu.vector_store %arg8[%c0_17, %c0_18], %51 {strides = array<i32>} : memref<4x128xf32, #tpu.memory_space<vmem>>, vector<4x128xf32>,
    %c0_i32_19 = arith.constant 0 : i32
    %54 = arith.cmpi eq, %arg2, %c0_i32_19 : i32
    %55 = arith.extui %54 : i1 to i32
    %c0_i32_20 = arith.constant 0 : i32
    %56 = arith.cmpi ne, %55, %c0_i32_20 : i32
    scf.if %56 {
      %c0_21 = arith.constant 0 : index
      %c0_22 = arith.constant 0 : index
      %57 = vector.load %arg7[%c0_21, %c0_22] : memref<4x128xf32, #tpu.memory_space<vmem>>, vector<4x128xf32>
      %cst_23 = arith.constant dense<0.000000e+00> : vector<4xf32>
      %58 = vector.multi_reduction <add>, %57, %cst_23 [1] : vector<4x128xf32> to vector<4xf32>
      %59 = vector.shape_cast %58 : vector<4xf32> to vector<4x1xf32>
      %c0_24 = arith.constant 0 : index
      %c0_25 = arith.constant 0 : index
      %c0_26 = arith.constant 0 : index
      %c0_27 = arith.constant 0 : index
      %60 = vector.load %arg5[%c0_24, %c0_25, %c0_26, %c0_27] : memref<1x1x4x1xf32, #tpu.memory_space<vmem>>, vector<1x1x4x1xf32>
      %61 = vector.shape_cast %60 : vector<1x1x4x1xf32> to vector<4x1xf32>
      %62 = vector.shape_cast %59 : vector<4x1xf32> to vector<1x1x4x1xf32>
      tpu.vector_store %arg5[%c0_24, %c0_25, %c0_26, %c0_27], %62 {strides = array<i32>} : memref<1x1x4x1xf32, #tpu.memory_space<vmem>>, vector<1x1x4x1xf32>,
      %c0_28 = arith.constant 0 : index
      %c0_29 = arith.constant 0 : index
      %63 = vector.load %arg8[%c0_28, %c0_29] : memref<4x128xf32, #tpu.memory_space<vmem>>, vector<4x128xf32>
      %cst_30 = arith.constant dense<0.000000e+00> : vector<4xf32>
      %64 = vector.multi_reduction <add>, %63, %cst_30 [1] : vector<4x128xf32> to vector<4xf32>
      %65 = vector.shape_cast %64 : vector<4xf32> to vector<4x1xf32>
      %c0_31 = arith.constant 0 : index
      %c0_32 = arith.constant 0 : index
      %c0_33 = arith.constant 0 : index
      %c0_34 = arith.constant 0 : index
      %66 = vector.load %arg6[%c0_31, %c0_32, %c0_33, %c0_34] : memref<1x1x4x1xf32, #tpu.memory_space<vmem>>, vector<1x1x4x1xf32>
      %67 = vector.shape_cast %66 : vector<1x1x4x1xf32> to vector<4x1xf32>
      %68 = vector.shape_cast %65 : vector<4x1xf32> to vector<1x1x4x1xf32>
      tpu.vector_store %arg6[%c0_31, %c0_32, %c0_33, %c0_34], %68 {strides = array<i32>} : memref<1x1x4x1xf32, #tpu.memory_space<vmem>>, vector<1x1x4x1xf32>,
    } else {
    }
    return
  }
  func.func @transform_0(%arg0: i32, %arg1: i32, %arg2: i32) -> (i32, i32, i32) {
    %c1_i32 = arith.constant 1 : i32
    %0 = arith.muli %arg0, %c1_i32 : i32
    %1 = arith.addi %0, %arg2 : i32
    %c0_i32 = arith.constant 0 : i32
    %2 = arith.minsi %1, %c0_i32 : i32
    %c0_i32_0 = arith.constant 0 : i32
    %c0_i32_1 = arith.constant 0 : i32
    return %arg1, %c0_i32_0, %2 : i32, i32, i32
  }
  func.func @transform_1(%arg0: i32, %arg1: i32, %arg2: i32) -> (i32, i32, i32) {
    %c1_i32 = arith.constant 1 : i32
    %0 = arith.muli %arg0, %c1_i32 : i32
    %1 = arith.addi %0, %arg2 : i32
    %c0_i32 = arith.constant 0 : i32
    %2 = arith.minsi %1, %c0_i32 : i32
    %c0_i32_0 = arith.constant 0 : i32
    %c0_i32_1 = arith.constant 0 : i32
    return %arg1, %c0_i32_0, %2 : i32, i32, i32
  }
  func.func @transform_2(%arg0: i32, %arg1: i32, %arg2: i32) -> (i32, i32, i32, i32) {
    %c0_i32 = arith.constant 0 : i32
    %c0_i32_0 = arith.constant 0 : i32
    %c0_i32_1 = arith.constant 0 : i32
    return %arg0, %arg1, %c0_i32, %c0_i32_0 : i32, i32, i32, i32
  }
  func.func @transform_3(%arg0: i32, %arg1: i32, %arg2: i32) -> (i32, i32, i32, i32) {
    %c0_i32 = arith.constant 0 : i32
    %c0_i32_0 = arith.constant 0 : i32
    %c0_i32_1 = arith.constant 0 : i32
    return %arg0, %arg1, %c0_i32, %c0_i32_0 : i32, i32, i32, i32
  }
}

</mosaic_0001>

<bundles_post_ra>
// kernel: tpu_custom_call.1
= control target key start
LH: loop header
LB: loop body
LE: loop exit
PB: predicated region body
PF: predicated region fallthrough
CT: control target
= control target key end

     0   :  { %9 = vsyncpa [#allocation5], 0  ;;  %s1009_s0 = inlined_call_operand.hbm [shape: f32[2,4,256], index: 0, kind: input, shape index: {}]   ;;  %s1010_s1 = inlined_call_operand.hbm [shape: s32[2,1,256], index: 1, kind: input, shape index: {}]   ;;  %s1011_s2 = inlined_call_operand.vmem [shape: f32[2,2,4,1], index: 2, kind: output, shape index: {0}]   ;;  %s1012_s3 = inlined_call_operand.vmem [shape: f32[2,2,4,1], index: 3, kind: output, shape index: {1}]  }
   0x1   :  { %11 = vsyncpa [#allocation5 + $0x1], 0 }
   0x2   :  { %12 = vsyncpa [#allocation7], 0 }
   0x3   :  { %14 = vsyncpa [#allocation7 + $0x1], 0  ;;  %s837_s12 = smov 0   ;;  %s839_s13 = smov 0  }
   0x4   :  { %s841_s14 = smov 0   ;;  %s843_s15 = smov 0  }
   0x5   :  { %s845_s16 = smov 0   ;;  %s847_s17 = smov 0  }
   0x6   :  { %s849_s18 = smov 0   ;;  %s851_s19 = smov 0  }
   0x7 LB: > { %s574_s20 = sadd.s32 4294967295, %s810_s19   ;;  %s35_s21 = sadd.s32 1, %s802_s17  ;;  %s810_s19 = sphi %s851_s19, %s20_s19   ;;  %s806_s18 = sphi %s849_s18, %s1024_s18   ;;  %s802_s17 = sphi %s847_s17, %s1023_s17   ;;  %s798_s16 = sphi %s845_s16, %s1022_s16   ;;  %s794_s15 = sphi %s843_s15, %s1021_s15   ;;  %s790_s14 = sphi %s841_s14, %s1020_s14   ;;  %s786_s13 = sphi %s839_s13, %s1019_s13   ;;  %s782_s12 = sphi %s837_s12, %s1018_s12  }
   0x8   : > { %p37_p0 = scmp.ge.s32.totalorder %s35_s21, 2  ;;  %s39_s22 = sadd.s32 1, %s806_s18 }
   0x9   : > { %s54_s23 = sadd.s32 1, %s790_s14  ;;  %p61_p2 = scmp.ne.s32.totalorder %s790_s14, %s786_s13 }
   0xa   : > { %s1026_s21 = smov (%p37_p0, %s35_s21), 0  ;;  %s1028_s22 = smov (!%p37_p0, %s39_s22), %s806_s18 }
   0xb   : > { %p41_p1 = scmp.ge.s32.totalorder %s1028_s22, 2  ;;  %s49_s24 = ssub.s32 %s802_s17, %s1026_s21 }
   0xc   : > { %p62_p3 = scmp.eq.s32.totalorder %s810_s19, 0  ;;  %p67_p5 = scmp.ne.s32.totalorder %s786_s13, %s782_s12 }
   0xd   : > { %s1030_s22 = smov (%p41_p1, %s1028_s22), 0  ;;  %p68_p6 = scmp.eq.s32.totalorder %s574_s20, 0 }
   0xe   : > { %p889_p4 = por %p62_p3, %p61_p2  ;;  %p610_p7 = scmp.lt.s32.totalorder %s810_s19, 4 }
   0xf   : > { %p895_p8 = por %p68_p6, %p67_p5  ;;  %s900_s27 = sand.u32 1, %s790_s14  }
  0x10   : > { %s578_s28 = sshll.u32 %s900_s27, 3  ;;  %p52_p9 = scmp.eq.s32.totalorder %s49_s24, 0 }
  0x11   : > { %s185_s30 = scalar_lea.vmem [#allocation4], %s578_s28  ;;  %s778_s5 = sshll.u32 %s802_s17, 7 }
  0x12   : > { %s904_s29 = scalar_select %p52_p9, %s790_s14, %s54_s23  }
  0x13   : > { %s198_s4 = sshll.u32 %s185_s30, 4  ;;  %s196_s8 = scalar_lea.hbm %s1009_s0, %s778_s5  ;;  %s907_s4 = int_to_ptr.vmem [resolvable:$true] %s198_s4 }
  0x14   : > { %p914_p10 = pnand %p610_p7, %p889_p4  ;;  %p227_p12 = scmp.lt.s32.totalorder %s810_s19, 5 }
  0x15   : > { %s182_s10 = scalar_lea.sflag [#allocation5], %s900_s27  ;;  %s682_s11 = scalar_lea.hbm %s196_s8, 128 }
  0x16   : > { %p683_p13 = scmp.ne.s32.totalorder %s196_s8, %s682_s11  ;;  %p684_p0 = pneg %p914_p10 }
  0x17   : > { %s687_s23 = scalar_lea.hbm %s1009_s0, 256 }
  0x18   : > { %p685_p1 = pnand %p684_p0, %p683_p13  ;;  %p689_p3 = scmp.lt.s32.totalorder %s687_s23, %s682_s11 }
  0x1a   : > { %p686_p2 = pneg %p685_p1 }
  0x1c   : > { %p691_p4 = pnand %p689_p3, %p686_p2 }
  0x1e   : > { %694 = shalt.err (!%p691_p4)
}
  0x1f   : > { %s695_s24 = scalar_lea.vmem %s907_s4, 128  ;;  %s812_s25 = smov [#allocation4]  }
  0x20   : > { %p696_p5 = scmp.ne.s32.totalorder %s907_s4, %s695_s24  ;;  %s700_s28 = sshll.u32 %s812_s25, 4  ;;  %s701_s28 = int_to_ptr.vmem [resolvable:$false] %s700_s28 }
  0x21   : > { %s702_s30 = scalar_lea.vmem %s701_s28, 256  ;;  %p703_p9 = scmp.lt.s32.totalorder %s907_s4, %s701_s28 }
  0x22   : > { %p698_p6 = pnand %p696_p5, %p684_p0  ;;  %p704_p13 = scmp.lt.s32.totalorder %s702_s30, %s695_s24 }
  0x24   : > { %p699_p7 = pneg %p698_p6  ;;  %p705_p1 = por %p704_p13, %p703_p9 }
  0x26   : > { %p706_p11 = pnand %p705_p1, %p699_p7 }
  0x28   : > { %709 = shalt.err (!%p706_p11)
}
  0x29   : > { %606 = dma.hbm_to_vmem [thread:$0]  (!%p914_p10), %s196_s8, 128, %s907_s4, %s182_s10  }
  0x2a   : > { %p1016_p2 = scmp.ge.s32.totalorder %s810_s19, 1  ;;  %s582_s6 = sshll.u32 %s900_s27, 1 }
  0x2b   : > { %s779_s7 = sshll.u32 %s802_s17, 5  ;;  %s209_s23 = scalar_lea.vmem [#allocation6], %s582_s6 }
  0x2c   : > { %p942_p3 = pnand %p1016_p2, %p227_p12  ;;  %s220_s20 = scalar_lea.hbm %s1010_s1, %s779_s7 }
  0x2d   : > { %s222_s24 = sshll.u32 %s209_s23, 4  ;;  %s206_s25 = scalar_lea.sflag [#allocation7], %s900_s27  ;;  %s223_s24 = int_to_ptr.vmem [resolvable:$true] %s222_s24 }
  0x2e   : > { %s710_s28 = scalar_lea.hbm %s220_s20, 32  ;;  %s715_s10 = scalar_lea.hbm %s1010_s1, 64 }
  0x2f   : > { %p711_p11 = scmp.ne.s32.totalorder %s220_s20, %s710_s28  ;;  %p717_p12 = scmp.lt.s32.totalorder %s715_s10, %s710_s28 }
  0x31   : > { %p713_p4 = pnand %p711_p11, %p684_p0 }
  0x33   : > { %p714_p5 = pneg %p713_p4 }
  0x35   : > { %p719_p6 = pnand %p717_p12, %p714_p5 }
  0x37   : > { %722 = shalt.err (!%p719_p6)
}
  0x38   : > { %s723_s30 = scalar_lea.vmem %s223_s24, 32  ;;  %s813_s27 = smov [#allocation6]  }
  0x39   : > { %p724_p7 = scmp.ne.s32.totalorder %s223_s24, %s723_s30  ;;  %s728_s6 = sshll.u32 %s813_s27, 4  ;;  %s729_s6 = int_to_ptr.vmem [resolvable:$false] %s728_s6 }
  0x3a   : > { %s730_s7 = scalar_lea.vmem %s729_s6, 64  ;;  %p731_p1 = scmp.lt.s32.totalorder %s223_s24, %s729_s6 }
  0x3b   : > { %p726_p9 = pnand %p724_p7, %p684_p0  ;;  %p732_p2 = scmp.lt.s32.totalorder %s730_s7, %s723_s30 }
  0x3d   : > { %p727_p13 = pneg %p726_p9  ;;  %p733_p11 = por %p732_p2, %p731_p1 }
  0x3f   : > { %p734_p4 = pnand %p733_p11, %p727_p13 }
  0x41   : > { %737 = shalt.err (!%p734_p4)
}
  0x42   : > { %609 = dma.hbm_to_vmem [thread:$0]  (!%p914_p10), %s220_s20, 32, %s223_s24, %s206_s25  }
  0x43   : > { %231 = sbr.rel (%p942_p3) target bundleno = 266 (0x10a), region = 28  ;;  %s233_s11 = sand.u32 (!%p942_p3), 1, %s786_s13  }
  0x44   : > { %s587_s12 = sshll.u32 (!%p942_p3), %s233_s11, 3  ;;  %s234_s23 = scalar_lea.sflag (!%p942_p3), [#allocation5], %s233_s11 }
  0x45   : > { %s237_s28 = scalar_lea.vmem (!%p942_p3), [#allocation4], %s587_s12 }
  0x48   : > { %771 = dma.done.wait (%p895_p8), %s234_s23, 128  }
  0x49   : > { %773 = vsyncadd (%p895_p8), %s234_s23, 4294967168  ;;  %s588_s4 = sshll.u32 %s233_s11, 1  ;;  %s243_s8 = scalar_lea.sflag [#allocation7], %s233_s11 }
  0x4a   : > { %s246_s10 = scalar_lea.vmem [#allocation6], %s588_s4 }
  0x4b   : > { %775 = dma.done.wait (%p895_p8), %s243_s8, 32  }
  0x4c   : > { %777 = vsyncadd (%p895_p8), %s243_s8, 4294967264  ;;  %v814_v0 = vmov 0.0   ;;  %v315_v1 = vld [vmem:[%s237_s28] sm:$0xff]  ;;  %v316_v3 = vld [vmem:[%s246_s10] sm:$0x3]  ;;  %v319_v4 = vlaneseq  ;;  %vm815_vm1 = vmmov 1  }
  0x4d   : > { %313 = vst [vmem:[#allocation2] sm:$0xf] %v814_v0  ;;  %314 = vst [vmem:[#allocation3] sm:$0xf] %v814_v0  ;;  %v594_v2 = vmul.f32 -1.442695, %v315_v1 }
  0x4e   : > { %vm333_vm0 = vcmp.eq.s32.totalorder %v316_v3, 255  ;;  %v336_v5 = vshrl.u32 %v319_v4, 7  ;;  %s593_s9 = sshll.u32 %s798_s16, 8  ;;  %v320_v8 = vand.u32 127, %v319_v4  ;;  %v816_v11 = vmov 0   ;;  %p293_p8 = scmp.lt.s32.totalorder %s798_s16, 1 }
  0x4f   : > { %678 = vpow2.f32 %v594_v2  ;;  %vm347_vm2 = vmxor %vm333_vm0, %vm815_vm1  ;;  %v334_v10 = vsel %vm333_vm0, 0, %v316_v3  ;;  %v322_v14 = vstv %s593_s9  ;;  %vm392_vm13 = vcmask 1043456   ;;  %p295_p10 = scmp.lt.s32.totalorder %s794_s15, 1 }
  0x50   : > { %v339_v7 = vsub.s32 0, %v336_v5  ;;  %v348_v12 = vsel %vm347_vm2, 1, %v816_v11  ;;  %v343_v13 = vsub.s32 1, %v336_v5  ;;  %v321_v17 = vadd.s32 128, %v320_v8  ;;  %s1032_s16 = smov (!%p293_p8, %s798_s16), 1 }
  0x51   : > { %v323_v20 = vadd.s32 %v322_v14, %v320_v8  ;;  %s1034_s15 = smov (!%p295_p10, %s794_s15), 1  ;;  %s589_s26 = sshll.u32 %s1032_s16, 1  ;;  %vm396_vm14 = vcmask 3072  }
  0x52   : > { %v340_v15 = vrot.slane %v334_v10, %v339_v7  ;;  %v352_v16 = vrot.slane %v348_v12, %v339_v7  ;;  %v344_v18 = vrot.slane %v334_v10, %v343_v13  ;;  %v356_v19 = vrot.slane %v348_v12, %v343_v13  ;;  %s298_s5 = sadd.s32 %s589_s26, %s1034_s15 }
  0x53   : > { %v324_v21 = vadd.s32 %v322_v14, %v321_v17  ;;  %vm325_vm7 = vcmp.lt.s32.totalorder %v323_v20, 256  ;;  %s590_s20 = sshll.u32 %s298_s5, 2 }
  0x54   : > { %vm345_vm3 = vcmp.eq.s32.totalorder %v336_v5, %v340_v15  ;;  %vm357_vm4 = vcmp.eq.s32.totalorder %v352_v16, 1  ;;  %vm346_vm5 = vcmp.eq.s32.totalorder %v336_v5, %v344_v18  ;;  %vm358_vm6 = vcmp.eq.s32.totalorder %v356_v19, 1  ;;  %v380_v23 = vld [vmem:[#allocation2] sm:$0xf]  ;;  %v381_v29 = vld [vmem:[#allocation3] sm:$0xf]  ;;  %s300_s30 = scalar_lea.vmem %s1011_s2, %s590_s20  ;;  %s308_s7 = scalar_lea.vmem %s1012_s3, %s590_s20 }
  0x55   : > { %vm359_vm8 = vmand %vm345_vm3, %vm357_vm4  ;;  %vm326_vm9 = vcmp.lt.s32.totalorder %v324_v21, 256 }
  0x56   : > { %vm360_vm10 = vmand %vm346_vm5, %vm358_vm6 }
  0x57   : > { %vm365_vm11 = vmand %vm359_vm8, %vm325_vm7 }
  0x58   : > { %v595_v22 = vsel %vm365_vm11, 1.0, %v814_v0  ;;  %vm366_vm12 = vmand %vm360_vm10, %vm326_vm9 }
  0x59   : > { %v596_v27 = vsel %vm366_vm12, 1.0, %v814_v0 }
  0x5c   : > { %v679_v6 = vpop.eup %678 }
  0x5d   : > { %v330_v9 = vadd.f32 1.0, %v679_v6 }
  0x5f   : > { %680 = vrcp.f32 %v330_v9 }
  0x6c   : > { %v681_v24 = vpop.eup %680 }
  0x6d   : > { %v368_v25 = vcombine.high %v681_v24, %v681_v24  ;;  %v370_v26 = vsel %vm365_vm11, %v681_v24, 0.0  ;;  %v372_v28 = vsel %vm325_vm7, %v681_v24, 0.0 }
  0x6e   : > { %v382_v30 = vadd.f32 %v380_v23, %v370_v26  ;;  %v378_v31 = vadd.f32 %v595_v22, %v372_v28 }
  0x6f   : > { %v371_v32 = vsel %vm366_vm12, %v368_v25, 0.0  ;;  %v373_v33 = vsel %vm326_vm9, %v368_v25, 0.0 }
  0x70   : > { %v384_v34 = vadd.f32 %v382_v30, %v371_v32  ;;  %v379_v35 = vadd.f32 %v596_v27, %v373_v33  ;;  %v383_v36 = vadd.f32 %v381_v29, %v378_v31 }
  0x72   : > { %386 = vst [vmem:[#allocation2] sm:$0xf] %v384_v34  ;;  %v385_v37 = vadd.f32 %v383_v36, %v379_v35 }
  0x74   : > { %387 = vst [vmem:[#allocation3] sm:$0xf] %v385_v37 }
  0x79   : > { %v391_v38 = vld [vmem:[#allocation2] sm:$0xf] }
  0x7a   : > { %v393_v39 = vsel %vm392_vm13, %v391_v38, 0.0 }
  0x7b   : > { %394 = vadd.xlane.f32.xlu0 %v393_v39  ;;  %v398_v40 = vld [vmem:[#allocation3] sm:$0xf] }
  0x7c   : > { %v399_v41 = vsel %vm392_vm13, %v398_v40, 0.0 }
  0x7f   : > { %400 = vadd.xlane.f32.xlu0 %v399_v41 }
 0x104   : > { %v395_v42 = vpop.xlane.xlu0 %394 }
 0x105   : > { %397 = vst.msk [vmem:[%s300_s30] sm:$0xf] %vm396_vm14, %v395_v42 }
 0x108   : > { %v401_v43 = vpop.xlane.xlu0 %400 }
 0x109   : > { %402 = vst.msk [vmem:[%s308_s7] sm:$0xf] %vm396_vm14, %v401_v43 }
 0x10a PF: > { %s20_s19 = sadd.s32 1, %s810_s19   ;;  %s1018_s12 = smov %s786_s13 }
 0x10b   : > { %p17_p0 = scmp.ge.s32.totalorder %s20_s19, 6   ;;  %s1019_s13 = smov %s790_s14 }
 0x10c   : > { %s1020_s14 = smov %s904_s29  ;;  %s1021_s15 = smov %s802_s17 }
 0x10d   : > { %s1022_s16 = smov %s806_s18  ;;  %s1023_s17 = smov %s1026_s21 }
 0x10e   : > { %s1024_s18 = smov %s1030_s22  ;;  %19 = sbr.rel (!%p17_p0) target bundleno = 7 (0x7), region = 101 }
 0x113   :  { %452 = vsyncpa [#allocation5], 1 }
 0x114   :  { %454 = vsyncpa [#allocation5 + $0x1], 1 }
 0x115   :  { %455 = vsyncpa [#allocation7], 1 }
 0x116   :  { %457 = vsyncpa [#allocation7 + $0x1], 1 }

</bundles_post_ra>
